<compile_context>
chip_gen: v7x
topology: tpu7x:2x2x1
jax: 0.10.0
libtpu: 0.0.40
codegen_flags: <defaults>
</compile_context>

<pallas_src>
import math

import jax
import jax.numpy as jnp
from jax.experimental import pallas as pl
from jax.experimental.pallas import tpu as pltpu


# ---------------------------------------------------------------------------
# Primary path: zero-copy identity via input/output aliasing.
# ---------------------------------------------------------------------------

def _alias_identity_kernel(f_ref, o_ref):
    # Output buffer is aliased to the input buffer (input_output_aliases),
    # so there is nothing to move.  touch() pins a fake read+write dependency
    # so the aliased output is considered produced by this kernel.
    del f_ref
    pltpu.touch(o_ref)


def _identity_alias(features):
    return pl.pallas_call(
        _alias_identity_kernel,
        out_shape=jax.ShapeDtypeStruct(features.shape, features.dtype),
        in_specs=[pl.BlockSpec(memory_space=pl.ANY)],
        out_specs=pl.BlockSpec(memory_space=pl.ANY),
        input_output_aliases={0: 0},
        compiler_params=pltpu.CompilerParams(has_side_effects=True),
    )(features)


# ---------------------------------------------------------------------------
# Fallback path: lane-dense HBM->HBM copy through VMEM (BlockSpec pipeline).
# Only used if the aliased no-op path fails to lower on this JAX/Mosaic build.
# ---------------------------------------------------------------------------

_BLOCK_BYTES = 4 * 1024 * 1024           # per-block budget for the copy path
_VMEM_LIMIT = 32 * 1024 * 1024           # 4x block (double-buffered in + out) + headroom


def _copy_kernel(f_ref, o_ref):
    o_ref[...] = f_ref[...]


def _best_lane_width(total):
    """Largest lane-dense last dim (multiple of 128) that divides `total`."""
    for lanes in (4096, 2048, 1024, 512, 256, 128):
        if total % lanes == 0:
            return lanes
    return None


def _copy_2d(flat2d):
    """Lane-dense copy of a (rows, lanes) array, lanes a multiple of 128."""
    rows, lanes = flat2d.shape
    itemsize = jnp.dtype(flat2d.dtype).itemsize
    # Dtype-aware sublane packing: 8 for 4-byte, 16 for bf16, 32 for int8/fp8.
    sublane = max(8, 32 // itemsize)
    max_rows = max(sublane, _BLOCK_BYTES // (lanes * itemsize))
    max_rows = max(sublane, (max_rows // sublane) * sublane)
    if rows <= max_rows:
        if rows >= 2 * sublane and rows % (2 * sublane) == 0:
            # Keep >=2 grid steps so the "parallel" axis can split across
            # v7x's two TensorCores (no effect on 1-TC v5e/v6e).
            block_rows = rows // 2
        else:
            block_rows = rows             # full extent -> always layout-legal
    else:
        block_rows = max_rows
    grid = (pl.cdiv(rows, block_rows),)
    return pl.pallas_call(
        _copy_kernel,
        out_shape=jax.ShapeDtypeStruct(flat2d.shape, flat2d.dtype),
        grid=grid,
        in_specs=[pl.BlockSpec((block_rows, lanes), lambda i: (i, 0))],
        out_specs=pl.BlockSpec((block_rows, lanes), lambda i: (i, 0)),
        compiler_params=pltpu.CompilerParams(
            dimension_semantics=("parallel",),
            vmem_limit_bytes=_VMEM_LIMIT),
    )(flat2d)


def _copy_1d(flat):
    """Ragged element counts: lane-dense 1-D chunks, masked tail block only."""
    (n,) = flat.shape
    itemsize = jnp.dtype(flat.dtype).itemsize
    max_chunk = max(128, ((_BLOCK_BYTES // itemsize) // 128) * 128)
    chunk = n if n <= max_chunk else max_chunk
    grid = (pl.cdiv(n, chunk),)
    return pl.pallas_call(
        _copy_kernel,
        out_shape=jax.ShapeDtypeStruct(flat.shape, flat.dtype),
        grid=grid,
        in_specs=[pl.BlockSpec((chunk,), lambda i: (i,))],
        out_specs=pl.BlockSpec((chunk,), lambda i: (i,)),
        compiler_params=pltpu.CompilerParams(
            dimension_semantics=("parallel",),
            vmem_limit_bytes=_VMEM_LIMIT),
    )(flat)


def _identity_copy(features):
    total = math.prod(features.shape) if features.ndim > 0 else 1
    lanes = _best_lane_width(total)
    if lanes is not None:
        # Lane-dense fast path: flatten to (rows, lanes); the reshape is pure
        # layout plumbing on a contiguous array (no compute hoisted).
        flat = features.reshape(total // lanes, lanes)
        return _copy_2d(flat).reshape(features.shape)
    # Ragged element count: flatten and copy in multiple-of-128 chunks
    # (only the final block's store is masked).
    return _copy_1d(features.reshape(total)).reshape(features.shape)


# ---------------------------------------------------------------------------
# Public forward.
# ---------------------------------------------------------------------------

_ALIAS_SUPPORTED = None  # lazily determined; falls back to the copy kernel


def simple_voxel_forward(features):
    """Pallas implementation of SimpleVoxel.forward (identity pass-through)."""
    global _ALIAS_SUPPORTED
    if features.size == 0:
        return features                    # nothing to do

    if _ALIAS_SUPPORTED is not False:
        try:
            out = _identity_alias(features)
            _ALIAS_SUPPORTED = True
            return out
        except Exception:
            # TODO(synk): if the aliased no-op path is rejected by this
            # toolchain, fall back to the near-roofline lane-dense copy.
            _ALIAS_SUPPORTED = False

    return _identity_copy(features)


class SimpleVoxel:
    """JAX/Pallas mirror of the PyTorch SimpleVoxel module.

    The reference module declares no parameters and its forward is identity,
    so num_filters / use_norm / with_distance are unused.
    """

    def __init__(self, num_input_features=4, use_norm=True,
                 num_filters=(32, 128), with_distance=False,
                 name="VoxelFeatureExtractor"):
        self.name = name
        self.num_input_features = num_input_features

    def __call__(self, features, **kwargs):
        return simple_voxel_forward(features)


if __name__ == "__main__":
    key = jax.random.PRNGKey(0)
    # Typical voxel feature tensor: (num_voxels, max_points_per_voxel, C)
    num_voxels, max_points, num_input_features = 32, 8, 4
    features = jax.random.normal(
        key, (num_voxels, max_points, num_input_features), dtype=jnp.float32)

    model = SimpleVoxel(num_input_features=num_input_features)
    out = jax.block_until_ready(model(features))

    assert out.shape == features.shape and out.dtype == features.dtype
    assert bool(jnp.allclose(out, features)), "identity forward mismatch"
    print("KERNEL_OK")
</pallas_src>

<mosaic_0001>
module attributes {stable_mosaic.version = 11 : i64} {
  func.func @_alias_identity_kernel(%arg0: memref<32x8x4xf32, #tpu.memory_space<any>>, %arg1: memref<32x8x4xf32, #tpu.memory_space<any>>) attributes {dimension_semantics = [], scalar_prefetch = 0 : i64, scratch_operands = 0 : i64, tpu.core_type = #tpu.core_type<tc>} {
    return
  }
}

module attributes {stable_mosaic.version = 11 : i64} {
  func.func @_copy_kernel(%arg0: i32, %arg1: memref<1x1024xf32, #tpu.memory_space<vmem>>, %arg2: memref<1x1024xf32, #tpu.memory_space<vmem>>) attributes {dimension_semantics = [#tpu.dimension_semantics<parallel>], iteration_bounds = array<i64: 1>, scalar_prefetch = 0 : i64, scratch_operands = 0 : i64, tpu.core_type = #tpu.core_type<tc>, window_params = [{transform_indices = @transform_0, window_bounds = array<i64: 1, 1024>}, {transform_indices = @transform_1, window_bounds = array<i64: 1, 1024>}]} {
    %c0 = arith.constant 0 : index
    %c0_0 = arith.constant 0 : index
    %0 = vector.load %arg1[%c0, %c0_0] : memref<1x1024xf32, #tpu.memory_space<vmem>>, vector<1x1024xf32>
    %c0_1 = arith.constant 0 : index
    %c0_2 = arith.constant 0 : index
    %1 = vector.load %arg2[%c0_1, %c0_2] : memref<1x1024xf32, #tpu.memory_space<vmem>>, vector<1x1024xf32>
    tpu.vector_store %arg2[%c0_1, %c0_2], %0 {strides = array<i32>} : memref<1x1024xf32, #tpu.memory_space<vmem>>, vector<1x1024xf32>,
    return
  }
  func.func @transform_0(%arg0: i32) -> (i32, i32) {
    %c0_i32 = arith.constant 0 : i32
    %c0_i32_0 = arith.constant 0 : i32
    return %arg0, %c0_i32 : i32, i32
  }
  func.func @transform_1(%arg0: i32) -> (i32, i32) {
    %c0_i32 = arith.constant 0 : i32
    %c0_i32_0 = arith.constant 0 : i32
    return %arg0, %c0_i32 : i32, i32
  }
}

</mosaic_0001>

<bundles_post_ra>
// kernel: tpu_custom_call.1
= control target key start
LH: loop header
LB: loop body
LE: loop exit
PB: predicated region body
PF: predicated region fallthrough
CT: control target
= control target key end

     0   :  { %s16_s0 = inlined_call_operand.vmem [shape: f32[32,8,4], index: 0, kind: input, shape index: {}, may-alias: {0,1}]   ;;  %s17_s1 = inlined_call_operand.vmem [shape: f32[32,8,4], index: 1, kind: output, shape index: {}, may-alias: {0,1}]  }

// kernel: tpu_custom_call.1
= control target key start
LH: loop header
LB: loop body
LE: loop exit
PB: predicated region body
PF: predicated region fallthrough
CT: control target
= control target key end

     0   :  { %6 = vsyncpa [#allocation3], 0  ;;  %s124_s0 = inlined_call_operand.hbm [shape: f32[1,1024], index: 0, kind: input, shape index: {}]   ;;  %s125_s1 = inlined_call_operand.hbm [shape: f32[1,1024], index: 1, kind: output, shape index: {}]  }
   0x1   :  { %7 = vsyncpa [#allocation4], 0  ;;  %s88_s6 = smov [#allocation2]   ;;  %s40_s10 = scalar_lea.hbm %s124_s0, 128 }
   0x2   :  { %s14_s7 = sshll.u32 %s88_s6, 4  ;;  %p41_p0 = scmp.ne.s32.totalorder %s124_s0, %s40_s10  ;;  %s15_s7 = int_to_ptr.vmem [resolvable:$true] %s14_s7 }
   0x3   :  { %p44_p1 = scmp.lt.u32.totalorder %s40_s10, %s124_s0 }
   0x5   :  { %p46_p2 = pnand %p44_p1, %p41_p0 }
   0x7   :  { %49 = shalt.err (!%p46_p2)
}
   0x8   :  { %s50_s15 = scalar_lea.vmem %s15_s7, 128  ;;  %p55_p4 = scmp.lt.s32.totalorder %s15_s7, %s15_s7 }
   0x9   :  { %p51_p3 = scmp.ne.s32.totalorder %s15_s7, %s50_s15  ;;  %p56_p5 = scmp.lt.s32.totalorder %s50_s15, %s50_s15 }
   0xb   :  { %p57_p6 = por %p56_p5, %p55_p4 }
   0xd   :  { %p58_p7 = pnand %p57_p6, %p51_p3 }
   0xf   :  { %61 = shalt.err (!%p58_p7)
}
  0x10   :  { %17 = dma.hbm_to_vmem [thread:$0]  %s124_s0, 128, %s15_s7, [#allocation3]  }
  0x11   :  { %84 = dma.done.wait [#allocation3], 128  }
  0x12   :  { %85 = vsyncadd [#allocation3], 4294967168  ;;  %s89_s18 = smov [#allocation5]   ;;  %v21_v0 = vld [vmem:[#allocation2] sm:$0xff] }
  0x13   :  { %s29_s19 = sshll.u32 %s89_s18, 4  ;;  %22 = vst [vmem:[#allocation5] sm:$0xff] %v21_v0  ;;  %s30_s19 = int_to_ptr.vmem [resolvable:$true] %s29_s19 }
  0x14   :  { %s62_s20 = scalar_lea.vmem %s30_s19, 128  ;;  %p67_p9 = scmp.lt.s32.totalorder %s30_s19, %s30_s19 }
  0x15   :  { %p63_p8 = scmp.ne.s32.totalorder %s30_s19, %s62_s20  ;;  %p68_p10 = scmp.lt.s32.totalorder %s62_s20, %s62_s20 }
  0x17   :  { %p69_p11 = por %p68_p10, %p67_p9 }
  0x19   :  { %p70_p12 = pnand %p69_p11, %p63_p8 }
  0x1b   :  { %73 = shalt.err (!%p70_p12)
}
  0x1c   :  { %s74_s23 = scalar_lea.hbm %s125_s1, 128 }
  0x1d   :  { %p75_p13 = scmp.ne.s32.totalorder %s125_s1, %s74_s23  ;;  %p78_p0 = scmp.lt.u32.totalorder %s74_s23, %s125_s1 }
  0x1f   :  { %p80_p1 = pnand %p78_p0, %p75_p13 }
  0x21   :  { %83 = shalt.err (!%p80_p1)
}
  0x22   :  { %32 = dma.vmem_to_hbm [thread:$0]  %s30_s19, 128, %s125_s1, [#allocation4]  }
  0x23   :  { %86 = dma.done.wait [#allocation4], 128  }
  0x24   :  { %87 = vsyncadd [#allocation4], 4294967168 }
  0x25   :  { %36 = vsyncpa [#allocation3], 1 }
  0x26   :  { %37 = vsyncpa [#allocation4], 1 }

</bundles_post_ra>
